<compile_context>
chip_gen: v7x
topology: tpu7x:2x2x1
jax: 0.10.0
libtpu: 0.0.40
codegen_flags: <defaults>
</compile_context>

<pallas_src>
import functools

import numpy as np

import jax
import jax.numpy as jnp
from jax.experimental import pallas as pl
from jax.experimental.pallas import tpu as pltpu


_MASK_FILL = -9e15   # matches the PyTorch module's -9000000000000000.0 fill


def _round_up(x, m):
    return (x + m - 1) // m * m


def _pick_tile(n, candidates):
    for t in candidates:
        if t <= n and n % t == 0:
            return t
    return n


def _device_kind():
    try:
        return jax.devices()[0].device_kind.lower()
    except Exception:
        return ""


def _vmem_capacity_bytes():
    try:
        return int(pltpu.get_tpu_info().vmem_capacity_bytes)
    except Exception:
        return 64 * 1024 * 1024   # conservative (v7x per-TC figure)


# ----------------------------------------------------------------------------
# Pass A (row-tiled): h = x @ W  (f32),  f12 = h @ [a1 | a2]
# ----------------------------------------------------------------------------
def precompute_kernel(x_ref, w_ref, a12_ref, h_ref, f12_ref):
    # f32 MXU matmul; h feeds exp() downstream so keep full precision here.
    h = jnp.dot(x_ref[...], w_ref[...], preferred_element_type=jnp.float32)
    # Fused attention projections: one (tm,F)@(F,2) MXU op, single (tm,2) store.
    f12_ref[...] = jnp.dot(h, a12_ref[...], preferred_element_type=jnp.float32)
    h_ref[...] = h.astype(h_ref.dtype)      # bf16 copy for the attention matmul


# ----------------------------------------------------------------------------
# Pass B: online-softmax over key panels, per query-row tile
# ----------------------------------------------------------------------------
def gat_flash_kernel(f1_ref, f2_ref, adj_ref, h_ref, out_ref,
                     m_sc, l_sc, acc_sc, *, alpha, concat, exp_dtype):
    k = pl.program_id(1)

    @pl.when(k == 0)
    def _():
        m_sc[...] = jnp.full(m_sc.shape, -jnp.inf, m_sc.dtype)
        l_sc[...] = jnp.zeros(l_sc.shape, l_sc.dtype)
        acc_sc[...] = jnp.zeros(acc_sc.shape, acc_sc.dtype)

    # Logits for this (tr, tk) panel: broadcast (tr,1) + (1,tk).
    logits = f1_ref[...] + f2_ref[...]
    e = jnp.where(logits > 0, logits, alpha * logits)            # LeakyReLU
    masked = jnp.where(adj_ref[...] > 0, e, _MASK_FILL)          # mask non-edges

    # ---- online softmax update (running stats kept in f32) -------------------
    m_prev = m_sc[...]
    m_new = jnp.maximum(m_prev, jnp.max(masked, axis=1, keepdims=True))
    corr = jnp.exp(m_prev - m_new)                               # (tr,1) f32

    # exp in bf16 on v6e/v7x (EUP slot is the binding unit); f32 on v5e.
    p = jnp.exp((masked - m_new).astype(exp_dtype))              # (tr, tk)

    l_sc[...] = corr * l_sc[...] + jnp.sum(
        p.astype(jnp.float32), axis=1, keepdims=True)
    # Panel matmul: bf16 operands, f32 accumulation on the MXU.
    acc_sc[...] = corr * acc_sc[...] + jnp.dot(
        p.astype(jnp.bfloat16), h_ref[...], preferred_element_type=jnp.float32)
    m_sc[...] = m_new

    @pl.when(k == pl.num_programs(1) - 1)
    def _():
        h_prime = acc_sc[...] * pl.reciprocal(l_sc[...], approx=True)
        if concat:
            # ELU with a clamped, negative-only exp argument (no overflow for
            # large positive h_prime).
            neg = jnp.exp(jnp.minimum(h_prime, 0.0)) - 1.0
            h_prime = jnp.where(h_prime > 0, h_prime, neg)
        out_ref[...] = h_prime.astype(out_ref.dtype)


# ----------------------------------------------------------------------------
# Wrapper
# ----------------------------------------------------------------------------
def graph_attention_forward(x, W, a1, a2, adj, *, alpha=0.2, concat=True,
                            out_dtype=jnp.float32):
    N, in_features = x.shape
    out_features = W.shape[1]
    assert adj.shape == (N, N)

    # Adjacency: only the (adj > 0) predicate matters. Callers should pass a
    # pre-converted int8 / bool adjacency; converting a float adjacency here on
    # every call would add ~5x the kernel's own adjacency HBM traffic.
    if adj.dtype == jnp.bool_ or (jnp.issubdtype(adj.dtype, jnp.integer)
                                  and adj.dtype != jnp.int8):
        adj = adj.astype(jnp.int8)
    elif not jnp.issubdtype(adj.dtype, jnp.integer):
        adj = (adj > 0).astype(jnp.int8)   # fallback; prefer converting once upstream

    x = x.astype(jnp.float32)
    W = W.astype(jnp.float32)
    a12 = jnp.concatenate([a1.reshape(out_features, 1),
                           a2.reshape(out_features, 1)], axis=1).astype(jnp.float32)

    # Pad the node count to a lane-friendly multiple of 128. Padded rows/cols
    # are zero -> fully masked -> sliced off the output (semantics preserved).
    n_pad = _round_up(N, 128)
    if n_pad != N:
        x = jnp.pad(x, ((0, n_pad - N), (0, 0)))
        adj = jnp.pad(adj, ((0, n_pad - N), (0, n_pad - N)))

    # ---- Pass A: row-tiled precompute ---------------------------------------
    tm = 128   # n_pad is always a multiple of 128
    h_bf16, f12 = pl.pallas_call(
        precompute_kernel,
        out_shape=(
            jax.ShapeDtypeStruct((n_pad, out_features), jnp.bfloat16),
            jax.ShapeDtypeStruct((n_pad, 2), jnp.float32),
        ),
        grid_spec=pltpu.PrefetchScalarGridSpec(
            num_scalar_prefetch=0,
            grid=(n_pad // tm,),
            in_specs=[
                pl.BlockSpec((tm, in_features), lambda i: (i, 0)),
                pl.BlockSpec((in_features, out_features), lambda i: (0, 0)),
                pl.BlockSpec((out_features, 2), lambda i: (0, 0)),
            ],
            out_specs=[
                pl.BlockSpec((tm, out_features), lambda i: (i, 0)),
                pl.BlockSpec((tm, 2), lambda i: (i, 0)),
            ],
        ),
        compiler_params=pltpu.CompilerParams(dimension_semantics=("parallel",)),
    )(x, W, a12)

    # Tiny (N*8-byte) slices, hoisted out of the row/key loops.
    f1 = f12[:, 0:1]                       # (n_pad, 1)
    f2_row = f12[:, 1].reshape(1, n_pad)   # (1, n_pad), transposed once

    # ---- tile selection (generation-aware) -----------------------------------
    kind = _device_kind()
    # v6e: 128 MiB VMEM + 256-wide MXU -> prefer tr=256; v7x (64 MiB/TC) and
    # v5e (128-wide MXU): tr=128.
    row_candidates = ((256, 128, 64, 32, 16, 8) if "v6" in kind
                      else (128, 256, 64, 32, 16, 8))
    tr = _pick_tile(n_pad, row_candidates)
    tk = _pick_tile(n_pad, (512, 256, 128))
    # f32 exp on v5e (no bf16 EUP); bf16 exp elsewhere.
    exp_dtype = jnp.float32 if "v5" in kind else jnp.bfloat16

    grid = (n_pad // tr, n_pad // tk)

    # ---- explicit scoped-VMEM budget (tile footprint + headroom) -------------
    def blk(r, c, itemsize):
        return _round_up(r, 8) * _round_up(c, 128) * itemsize

    out_isz = np.dtype(out_dtype).itemsize
    per_step = (2 * blk(tr, 1, 4)                    # f1 (double-buffered)
                + 2 * blk(1, tk, 4)                  # f2 key panel
                + 2 * blk(tr, tk, 1)                 # adjacency panel (int8)
                + 2 * blk(tk, out_features, 2)       # h key panel (bf16)
                + 2 * blk(tr, out_features, out_isz)  # output block
                + 2 * blk(tr, 1, 4)                  # m, l scratch
                + blk(tr, out_features, 4))          # acc scratch
    vmem_limit = max(32 << 20, int(per_step * 1.5) + (4 << 20))
    vmem_limit = min(vmem_limit, int(_vmem_capacity_bytes() * 0.9))

    cost = pl.CostEstimate(
        flops=int(2 * n_pad * n_pad * out_features + 10 * n_pad * n_pad),
        transcendentals=int(n_pad * n_pad),
        bytes_accessed=int(n_pad * n_pad                                  # adj int8
                           + (n_pad // tr) * n_pad * out_features * 2    # h re-reads
                           + (n_pad // tr) * n_pad * 4 + n_pad * 4       # f2 / f1
                           + n_pad * out_features * out_isz),            # output
    )

    kernel = functools.partial(gat_flash_kernel, alpha=alpha, concat=concat,
                               exp_dtype=exp_dtype)

    out = pl.pallas_call(
        kernel,
        out_shape=jax.ShapeDtypeStruct((n_pad, out_features), out_dtype),
        grid_spec=pltpu.PrefetchScalarGridSpec(
            num_scalar_prefetch=0,
            grid=grid,
            in_specs=[
                pl.BlockSpec((tr, 1), lambda i, k: (i, 0)),             # f1 tile
                pl.BlockSpec((1, tk), lambda i, k: (0, k)),             # f2 key panel
                pl.BlockSpec((tr, tk), lambda i, k: (i, k)),            # adj panel
                pl.BlockSpec((tk, out_features), lambda i, k: (k, 0)),  # h key panel
            ],
            out_specs=pl.BlockSpec((tr, out_features), lambda i, k: (i, 0)),
            scratch_shapes=[
                pltpu.VMEM((tr, 1), jnp.float32),               # running max  m
                pltpu.VMEM((tr, 1), jnp.float32),               # running sum  l
                pltpu.VMEM((tr, out_features), jnp.float32),    # output accumulator
            ],
        ),
        compiler_params=pltpu.CompilerParams(
            dimension_semantics=("parallel", "arbitrary"),
            vmem_limit_bytes=vmem_limit,
        ),
        cost_estimate=cost,
    )(f1, f2_row, adj, h_bf16)

    return out[:N] if n_pad != N else out


# ----------------------------------------------------------------------------
# Reference + demo
# ----------------------------------------------------------------------------
def xavier_normal(key, shape, gain):
    fan_in, fan_out = shape[0], shape[1]
    std = gain * jnp.sqrt(2.0 / (fan_in + fan_out))
    return std * jax.random.normal(key, shape, dtype=jnp.float32)


def reference_forward(x, W, a1, a2, adj, alpha=0.2, concat=True):
    h = x @ W
    f1 = h @ a1
    f2 = h @ a2
    logits = f1 + f2.T
    e = jnp.where(logits > 0, logits, alpha * logits)
    masked = jnp.where(adj > 0, e, -9e15)
    attention = jax.nn.softmax(masked, axis=1)
    h_prime = attention @ h
    if concat:
        h_prime = jnp.where(h_prime > 0, h_prime, jnp.exp(h_prime) - 1.0)
    return h_prime


if __name__ == "__main__":
    N = 380             # not a multiple of 128 -> exercises the pad-to-128 path
    in_features = 64
    out_features = 128  # lane-dense output
    alpha = 0.2         # LeakyReLU negative slope
    gain = jnp.sqrt(2.0)

    key = jax.random.PRNGKey(0)
    kx, kadj, kw, ka1, ka2 = jax.random.split(key, 5)

    x = jax.random.normal(kx, (N, in_features), dtype=jnp.float32)
    # Random symmetric adjacency with self-loops.
    a_rand = jax.random.uniform(kadj, (N, N))
    adj_bool = ((a_rand + a_rand.T) > 1.4) | jnp.eye(N, dtype=bool)
    # Kernel input: pre-converted int8 adjacency (no per-call f32->int8 pass).
    adj_i8 = adj_bool.astype(jnp.int8)
    # Reference input: float adjacency, as the PyTorch module receives it.
    adj_f32 = adj_bool.astype(jnp.float32)

    W = xavier_normal(kw, (in_features, out_features), gain)
    a1 = xavier_normal(ka1, (out_features, 1), gain)
    a2 = xavier_normal(ka2, (out_features, 1), gain)

    out = graph_attention_forward(x, W, a1, a2, adj_i8, alpha=alpha, concat=True)
    out = jax.block_until_ready(out)

    ref = reference_forward(x, W, a1, a2, adj_f32, alpha=alpha, concat=True)
    assert out.shape == (N, out_features)
    # bf16 operands on the attention @ h matmul, bf16 exp, and the approx
    # reciprocal => ~1e-2 relative error budget vs. the f32 reference.
    # (An f32-exact path is available via exp_dtype / out_dtype if needed.)
    assert jnp.allclose(out, ref, atol=2e-2, rtol=2e-2), "mismatch vs reference"

    print("KERNEL_OK")
</pallas_src>

<mosaic_0001>
module attributes {stable_mosaic.version = 11 : i64} {
  func.func @precompute_kernel(%arg0: i32, %arg1: memref<128x64xf32, #tpu.memory_space<vmem>>, %arg2: memref<64x128xf32, #tpu.memory_space<vmem>>, %arg3: memref<128x2xf32, #tpu.memory_space<vmem>>, %arg4: memref<128x128xbf16, #tpu.memory_space<vmem>>, %arg5: memref<128x2xf32, #tpu.memory_space<vmem>>) attributes {dimension_semantics = [#tpu.dimension_semantics<parallel>], iteration_bounds = array<i64: 3>, scalar_prefetch = 0 : i64, scratch_operands = 0 : i64, tpu.core_type = #tpu.core_type<tc>, window_params = [{transform_indices = @transform_0, window_bounds = array<i64: 128, 64>}, {pipeline_mode = #tpu.pipeline_mode<synchronous>, transform_indices = @transform_1, window_bounds = array<i64: 64, 128>}, {pipeline_mode = #tpu.pipeline_mode<synchronous>, transform_indices = @transform_2, window_bounds = array<i64: 128, 2>}, {transform_indices = @transform_3, window_bounds = array<i64: 128, 128>}, {transform_indices = @transform_4, window_bounds = array<i64: 128, 2>}]} {
    %c0 = arith.constant 0 : index
    %c0_0 = arith.constant 0 : index
    %0 = vector.load %arg1[%c0, %c0_0] : memref<128x64xf32, #tpu.memory_space<vmem>>, vector<128x64xf32>
    %c0_1 = arith.constant 0 : index
    %c0_2 = arith.constant 0 : index
    %1 = vector.load %arg2[%c0_1, %c0_2] : memref<64x128xf32, #tpu.memory_space<vmem>>, vector<64x128xf32>
    %cst = arith.constant dense<0.000000e+00> : vector<128x128xf32>
    %2 = tpu.matmul %0, %1, %cst {dimension_numbers = #tpu.dot_dimension_numbers<[1], [0], [0], [1], [0, 0, 1, 1], [], []>} : vector<128x64xf32>, vector<64x128xf32>, vector<128x128xf32> -> vector<128x128xf32>
    %c0_3 = arith.constant 0 : index
    %c0_4 = arith.constant 0 : index
    %3 = vector.load %arg3[%c0_3, %c0_4] : memref<128x2xf32, #tpu.memory_space<vmem>>, vector<128x2xf32>
    %cst_5 = arith.constant dense<0.000000e+00> : vector<128x2xf32>
    %4 = tpu.matmul %2, %3, %cst_5 {dimension_numbers = #tpu.dot_dimension_numbers<[1], [0], [0], [1], [0, 0, 1, 1], [], []>} : vector<128x128xf32>, vector<128x2xf32>, vector<128x2xf32> -> vector<128x2xf32>
    %c0_6 = arith.constant 0 : index
    %c0_7 = arith.constant 0 : index
    %5 = vector.load %arg5[%c0_6, %c0_7] : memref<128x2xf32, #tpu.memory_space<vmem>>, vector<128x2xf32>
    tpu.vector_store %arg5[%c0_6, %c0_7], %4 {strides = array<i32>} : memref<128x2xf32, #tpu.memory_space<vmem>>, vector<128x2xf32>,
    %6 = arith.truncf %2 : vector<128x128xf32> to vector<128x128xbf16>
    %c0_8 = arith.constant 0 : index
    %c0_9 = arith.constant 0 : index
    %7 = vector.load %arg4[%c0_8, %c0_9] : memref<128x128xbf16, #tpu.memory_space<vmem>>, vector<128x128xbf16>
    tpu.vector_store %arg4[%c0_8, %c0_9], %6 {strides = array<i32>} : memref<128x128xbf16, #tpu.memory_space<vmem>>, vector<128x128xbf16>,
    return
  }
  func.func @transform_0(%arg0: i32) -> (i32, i32) {
    %c0_i32 = arith.constant 0 : i32
    %c0_i32_0 = arith.constant 0 : i32
    return %arg0, %c0_i32 : i32, i32
  }
  func.func @transform_1(%arg0: i32) -> (i32, i32) {
    %c0_i32 = arith.constant 0 : i32
    %c0_i32_0 = arith.constant 0 : i32
    %c0_i32_1 = arith.constant 0 : i32
    return %c0_i32, %c0_i32_0 : i32, i32
  }
  func.func @transform_2(%arg0: i32) -> (i32, i32) {
    %c0_i32 = arith.constant 0 : i32
    %c0_i32_0 = arith.constant 0 : i32
    %c0_i32_1 = arith.constant 0 : i32
    return %c0_i32, %c0_i32_0 : i32, i32
  }
  func.func @transform_3(%arg0: i32) -> (i32, i32) {
    %c0_i32 = arith.constant 0 : i32
    %c0_i32_0 = arith.constant 0 : i32
    return %arg0, %c0_i32 : i32, i32
  }
  func.func @transform_4(%arg0: i32) -> (i32, i32) {
    %c0_i32 = arith.constant 0 : i32
    %c0_i32_0 = arith.constant 0 : i32
    return %arg0, %c0_i32 : i32, i32
  }
}

</mosaic_0001>

<bundles_post_ra>
// kernel: tpu_custom_call.1
= control target key start
LH: loop header
LB: loop body
LE: loop exit
PB: predicated region body
PF: predicated region fallthrough
CT: control target
= control target key end

     0   :  { %10 = vsyncpa [#allocation3], 0  ;;  %s1525_s0 = inlined_call_operand.vmem [shape: f32[384,64], index: 0, kind: input, shape index: {}]   ;;  %s1526_s1 = inlined_call_operand.vmem [shape: f32[64,128], index: 1, kind: input, shape index: {}]   ;;  %s1527_s2 = inlined_call_operand.vmem [shape: f32[128,2], index: 2, kind: input, shape index: {}]   ;;  %s1528_s3 = inlined_call_operand.hbm [shape: bf16[384,128], index: 3, kind: output, shape index: {0}]   ;;  %s1529_s4 = inlined_call_operand.vmem [shape: f32[384,2], index: 4, kind: output, shape index: {1}]  }
   0x1   :  { %12 = vsyncpa [#allocation3 + $0x1], 0  ;;  %s1258_s15 = smov 0   ;;  %s1260_s16 = smov 0  }
   0x2   :  { %s1262_s17 = smov 0   ;;  %s1264_s18 = smov 0  }
   0x3 LB: > { %s1279_s19 = sadd.s32 4294967295, %s1228_s18   ;;  %s799_s20 = sadd.s32 4294967294, %s1228_s18   ;;  %s1228_s18 = sphi %s1264_s18, %s1535_s18   ;;  %s1224_s17 = sphi %s1262_s17, %s1534_s17   ;;  %s1220_s16 = sphi %s1260_s16, %s1533_s16   ;;  %s1216_s15 = sphi %s1258_s15, %s1532_s15  }
   0x4   : > { %s1283_s21 = sadd.s32 1, %s1228_s18   ;;  %s93_s22 = sadd.s32 1, %s1224_s17 }
   0x5   : > { %s90_s23 = ssub.s32 %s1228_s18, %s1283_s21  ;;  %p103_p0 = scmp.ne.s32.totalorder %s1224_s17, %s1220_s16 }
   0x6   : > { %p91_p1 = scmp.eq.s32.totalorder %s90_s23, 0  ;;  %p104_p2 = scmp.eq.s32.totalorder %s1279_s19, 2 }
   0x7   : > { %p109_p3 = scmp.ne.s32.totalorder %s1220_s16, %s1216_s15  ;;  %p110_p4 = scmp.eq.s32.totalorder %s799_s20, 2 }
   0x8   : > { %s1294_s24 = scalar_select %p91_p1, %s1224_s17, %s93_s22  }
   0x9   : > { %p1296_p5 = por %p104_p2, %p103_p0  ;;  %p1300_p6 = por %p110_p4, %p109_p3 }
   0xa   : > { %p802_p7 = scmp.ge.s32.totalorder %s1228_s18, 1  ;;  %p169_p8 = scmp.lt.s32.totalorder %s1228_s18, 4 }
   0xc   : > { %p170_p9 = pnand %p802_p7, %p169_p8 }
   0xd   : > { %v229_v0 = vld [vmem:[%s1526_s1] sm:$0xff] (!%p170_p9)  ;;  %v230_v1 = vld [vmem:[%s1526_s1 + $0x8] sm:$0xff] (!%p170_p9)  ;;  %v231_v2 = vld [vmem:[%s1526_s1 + $0x10] sm:$0xff] (!%p170_p9)  ;;  %s804_s7 = sshll.u32 (!%p170_p9), %s1279_s19, 4  ;;  %vm237_vm0 = vcmask (!%p170_p9), 523264   ;;  %s190_s9 = sand.u32 (!%p170_p9), 1, %s1220_s16  }
   0xe   : > { %173 = sbr.rel (%p170_p9) target bundleno = 488 (0x1e8), region = 32  ;;  %v1061_v3 = vpack.c.bf16 (!%p170_p9), %v230_v1, %v229_v0  ;;  %v232_v4 = vld [vmem:[%s1526_s1 + $0x18] sm:$0xff] (!%p170_p9)  ;;  %p201_p10 = scmp.lt.s32.totalorder (!%p170_p9), %s804_s7, 47  ;;  %v233_v6 = vld [vmem:[%s1526_s1 + $0x20] sm:$0xff] (!%p170_p9)  ;;  %v234_v7 = vld [vmem:[%s1526_s1 + $0x28] sm:$0xff] (!%p170_p9) }
   0xf   : > { %v1065_v5 = vpack.c.bf16 (!%p170_p9), %v232_v4, %v231_v2  ;;  %v431_v8 = vld [vmem:[%s1527_s2] sm:$0xff] (!%p170_p9)  ;;  %v432_v9 = vld [vmem:[%s1527_s2 + $0x8] sm:$0xff] (!%p170_p9)  ;;  %v433_v11 = vld [vmem:[%s1527_s2 + $0x10] sm:$0xff] (!%p170_p9)  ;;  %v1069_v13 = vpack.c.bf16 (!%p170_p9), %v234_v7, %v233_v6  ;;  %s803_s10 = sshll.u32 (!%p170_p9), %s190_s9, 6  ;;  %s1445_s23 = scalar_lea.sflag (!%p170_p9), [#allocation3], %s190_s9 }
  0x10   : > { %1062 = vmatprep.subr.bf16.mxu0 (!%p170_p9), %v1061_v3  ;;  %v1077_v10 = vpack.c.bf16 (!%p170_p9), %v432_v9, %v431_v8  ;;  %v434_v12 = vld [vmem:[%s1527_s2 + $0x18] sm:$0xff] (!%p170_p9)  ;;  %v235_v14 = vld [vmem:[%s1526_s1 + $0x30] sm:$0xff] (!%p170_p9)  ;;  %v435_v18 = vld [vmem:[%s1527_s2 + $0x20] sm:$0xff] (!%p170_p9)  ;;  %s1424_s11 = scalar_lea.vmem (!%p170_p9), [#allocation2], %s803_s10 }
  0x11   : > { %1064 = vmatpush3.bf16.msra.mxu0 (!%p170_p9), %v1061_v3  ;;  %v236_v15 = vld [vmem:[%s1526_s1 + $0x38] sm:$0xff] (!%p170_p9)  ;;  %v1081_v17 = vpack.c.bf16 (!%p170_p9), %v434_v12, %v433_v11  ;;  %v436_v19 = vld [vmem:[%s1527_s2 + $0x28] sm:$0xff] (!%p170_p9)  ;;  %v437_v22 = vld [vmem:[%s1527_s2 + $0x30] sm:$0xff] (!%p170_p9)  ;;  %s708_s12 = sshll.u32 (!%p170_p9), %s1424_s11, 4  ;;  %s1441_s12 = int_to_ptr.vmem [resolvable:$true] %s708_s12 }
  0x12   : > { %1066 = vmatprep.subr.bf16.mxu0 (!%p170_p9), %v1065_v5  ;;  %1109 = vmatprep.subr.bf16.mxu1 (!%p170_p9), %v1077_v10  ;;  %v1073_v20 = vpack.c.bf16 (!%p170_p9), %v236_v15, %v235_v14  ;;  %v1085_v21 = vpack.c.bf16 (!%p170_p9), %v436_v19, %v435_v18  ;;  %v438_v23 = vld [vmem:[%s1527_s2 + $0x38] sm:$0xff] (!%p170_p9)  ;;  %v439_v26 = vld [vmem:[%s1527_s2 + $0x40] sm:$0xff] (!%p170_p9)  ;;  %v440_v27 = vld [vmem:[%s1527_s2 + $0x48] sm:$0xff] (!%p170_p9)  ;;  %s1166_s27 = scalar_lea.vmem (!%p170_p9), %s1441_s12, 1024 }
  0x13   : > { %1117 = vmatpush3.bf16.msra.mxu1 (!%p170_p9), %v1077_v10  ;;  %v1089_v24 = vpack.c.bf16 (!%p170_p9), %v438_v23, %v437_v22  ;;  %v1093_v29 = vpack.c.bf16 (!%p170_p9), %v440_v27, %v439_v26  ;;  %v441_v31 = vld [vmem:[%s1527_s2 + $0x50] sm:$0xff] (!%p170_p9)  ;;  %v442_v32 = vld [vmem:[%s1527_s2 + $0x58] sm:$0xff] (!%p170_p9)  ;;  %v443_v36 = vld [vmem:[%s1527_s2 + $0x60] sm:$0xff] (!%p170_p9)  ;;  %p1167_p11 = scmp.ne.s32.totalorder (!%p170_p9), %s1441_s12, %s1166_s27 }
  0x14   : > { %1110 = vmatprep.subr.bf16.mxu1 (!%p170_p9), %v1081_v17  ;;  %v1097_v34 = vpack.c.bf16 (!%p170_p9), %v442_v32, %v441_v31  ;;  %v444_v37 = vld [vmem:[%s1527_s2 + $0x68] sm:$0xff] (!%p170_p9)  ;;  %v445_v41 = vld [vmem:[%s1527_s2 + $0x70] sm:$0xff] (!%p170_p9)  ;;  %v446_v42 = vld [vmem:[%s1527_s2 + $0x78] sm:$0xff] (!%p170_p9) }
  0x15   : > { %s1537_s7 = smov (!%p201_p10, %s804_s7), 47  ;;  %1068 = vmatpush3.bf16.msra.mxu0 %v1065_v5  ;;  %v1101_v39 = vpack.c.bf16 %v444_v37, %v443_v36  ;;  %v1105_v44 = vpack.c.bf16 %v446_v42, %v445_v41  ;;  %p1168_p12 = pnand %p1167_p11, %p1296_p5 }
  0x16   : > { %s805_s5 = sshll.u32 %s1537_s7, 3  ;;  %1070 = vmatprep.subr.bf16.mxu0 %v1069_v13 }
  0x17   : > { %s1351_s13 = scalar_lea.vmem %s1525_s0, %s805_s5  ;;  %1118 = vmatpush3.bf16.msra.mxu1 %v1081_v17  ;;  %p1169_p13 = pneg %p1168_p12 }
  0x18   : > { %v213_v16 = vld [vmem:[%s1351_s13] sm:$0xff]  ;;  %1111 = vmatprep.subr.bf16.mxu1 %v1085_v21  ;;  %v214_v25 = vld [vmem:[%s1351_s13 + $0x8] sm:$0xff]  ;;  %v215_v28 = vld [vmem:[%s1351_s13 + $0x10] sm:$0xff] }
  0x19   : > { %981 = vmatprep.mubr.msk.f32.mxu0 %vm237_vm0, %v213_v16  ;;  %1072 = vmatpush3.bf16.msra.mxu0 %v1069_v13  ;;  %v216_v30 = vld [vmem:[%s1351_s13 + $0x18] sm:$0xff]  ;;  %v217_v33 = vld [vmem:[%s1351_s13 + $0x20] sm:$0xff]  ;;  %v218_v35 = vld [vmem:[%s1351_s13 + $0x28] sm:$0xff] }
  0x1a   : > { %1074 = vmatprep.subr.bf16.mxu0 %v1073_v20  ;;  %v219_v38 = vld [vmem:[%s1351_s13 + $0x30] sm:$0xff]  ;;  %v220_v40 = vld [vmem:[%s1351_s13 + $0x38] sm:$0xff]  ;;  %v221_v43 = vld [vmem:[%s1351_s13 + $0x40] sm:$0xff] }
  0x1b   : > { %1119 = vmatpush3.bf16.msra.mxu1 %v1085_v21  ;;  %v222_v45 = vld [vmem:[%s1351_s13 + $0x48] sm:$0xff]  ;;  %v223_v46 = vld [vmem:[%s1351_s13 + $0x50] sm:$0xff]  ;;  %v224_v47 = vld [vmem:[%s1351_s13 + $0x58] sm:$0xff] }
  0x1c   : > { %1112 = vmatprep.subr.bf16.mxu1 %v1089_v24  ;;  %v225_v48 = vld [vmem:[%s1351_s13 + $0x60] sm:$0xff]  ;;  %v226_v49 = vld [vmem:[%s1351_s13 + $0x68] sm:$0xff]  ;;  %v227_v50 = vld [vmem:[%s1351_s13 + $0x70] sm:$0xff] }
  0x1d   : > { %1076 = vmatpush3.bf16.msra.mxu0 %v1073_v20  ;;  %v228_v51 = vld [vmem:[%s1351_s13 + $0x78] sm:$0xff]  ;;  %s861_s13 = sshll.u32 %s1279_s19, 10  ;;  %s1230_s19 = smov [#allocation2]  }
  0x1e   : > { %1078 = vmatprep.subr.bf16.mxu0 %v1077_v10  ;;  %s1439_s22 = scalar_lea.hbm %s1528_s3, %s861_s13  ;;  %s1170_s28 = sshll.u32 %s1230_s19, 4  ;;  %s1171_s28 = int_to_ptr.vmem [resolvable:$false] %s1170_s28 }
  0x1f   : > { %1120 = vmatpush3.bf16.msra.mxu1 %v1089_v24  ;;  %s1172_s29 = scalar_lea.vmem %s1171_s28, 2048  ;;  %p1173_p0 = scmp.lt.s32.totalorder %s1441_s12, %s1171_s28 }
  0x20   : > { %982 = vmatmul.mubr.msk.f32.vlgmr.msra.gmra.mrb[0].mxu0 %vm237_vm0, %v214_v25  ;;  %1113 = vmatprep.subr.bf16.mxu1 %v1093_v29  ;;  %p1174_p1 = scmp.lt.s32.totalorder %s1172_s29, %s1166_s27 }
  0x21   : > { %984 = vmatprep.mubr.msk.f32.mxu0 %vm237_vm0, %v215_v28  ;;  %1080 = vmatpush3.bf16.msra.mxu0 %v1077_v10 }
  0x22   : > { %1082 = vmatprep.subr.bf16.mxu0 %v1081_v17  ;;  %p1175_p2 = por %p1174_p1, %p1173_p0 }
  0x23   : > { %1121 = vmatpush3.bf16.msra.mxu1 %v1093_v29 }
  0x24   : > { %985 = vmatmul.mubr.msk.f32.gmra.mrb[2].mxu0 %vm237_vm0, %v216_v30  ;;  %1114 = vmatprep.subr.bf16.mxu1 %v1097_v34  ;;  %p1176_p3 = pnand %p1175_p2, %p1169_p13 }
  0x25   : > { %987 = vmatprep.mubr.msk.f32.mxu0 %vm237_vm0, %v217_v33  ;;  %1084 = vmatpush3.bf16.msra.mxu0 %v1081_v17 }
  0x26   : > { %1086 = vmatprep.subr.bf16.mxu0 %v1085_v21 }
  0x27   : > { %1122 = vmatpush3.bf16.msra.mxu1 %v1097_v34 }
  0x28   : > { %988 = vmatmul.mubr.msk.f32.gmra.mrb[4].mxu0 %vm237_vm0, %v218_v35  ;;  %1115 = vmatprep.subr.bf16.mxu1 %v1101_v39 }
  0x29   : > { %990 = vmatprep.mubr.msk.f32.mxu0 %vm237_vm0, %v219_v38  ;;  %1088 = vmatpush3.bf16.msra.mxu0 %v1085_v21 }
  0x2a   : > { %1090 = vmatprep.subr.bf16.mxu0 %v1089_v24 }
  0x2b   : > { %1123 = vmatpush3.bf16.msra.mxu1 %v1101_v39 }
  0x2c   : > { %991 = vmatmul.mubr.msk.f32.gmra.mrb[6].mxu0 %vm237_vm0, %v220_v40  ;;  %1116 = vmatprep.subr.bf16.mxu1 %v1105_v44 }
  0x2d   : > { %993 = vmatprep.mubr.msk.f32.mxu0 %vm237_vm0, %v221_v43  ;;  %1092 = vmatpush3.bf16.msra.mxu0 %v1089_v24 }
  0x2e   : > { %1094 = vmatprep.subr.bf16.mxu0 %v1093_v29 }
  0x2f   : > { %1124 = vmatpush3.bf16.msra.mxu1 %v1105_v44 }
  0x30   : > { %994 = vmatmul.mubr.msk.f32.gmra.mrb[8].mxu0 %vm237_vm0, %v222_v45 }
  0x31   : > { %996 = vmatprep.mubr.msk.f32.mxu0 %vm237_vm0, %v223_v46  ;;  %1096 = vmatpush3.bf16.msra.mxu0 %v1093_v29 }
  0x32   : > { %1098 = vmatprep.subr.bf16.mxu0 %v1097_v34 }
  0x34   : > { %997 = vmatmul.mubr.msk.f32.gmra.mrb[10].mxu0 %vm237_vm0, %v224_v47 }
  0x35   : > { %999 = vmatprep.mubr.msk.f32.mxu0 %vm237_vm0, %v225_v48  ;;  %1100 = vmatpush3.bf16.msra.mxu0 %v1097_v34 }
  0x36   : > { %1102 = vmatprep.subr.bf16.mxu0 %v1101_v39 }
  0x38   : > { %1000 = vmatmul.mubr.msk.f32.gmra.mrb[12].mxu0 %vm237_vm0, %v226_v49 }
  0x39   : > { %1002 = vmatprep.mubr.msk.f32.mxu0 %vm237_vm0, %v227_v50  ;;  %1104 = vmatpush3.bf16.msra.mxu0 %v1101_v39 }
  0x3a   : > { %1106 = vmatprep.subr.bf16.mxu0 %v1105_v44 }
  0x3c   : > { %1003 = vmatmul.mubr.msk.f32.gmra.mrb[14].mxu0 %vm237_vm0, %v228_v51 }
  0x3d   : > { %1108 = vmatpush3.bf16.msra.mxu0 %v1105_v44 }
  0xf3   : > { %v983_v52 = vpop.f32.mrb[0].mxu0 }
  0xf4   : > { %v352_v53 = vpop.f32.mrb[1].mxu0 }
  0xf5   : > { %v865_v54 = vpack.c.bf16 %v983_v52, %v352_v53  ;;  %1037 = vmatprep.mubr.f32.mxu0 %v352_v53 }
  0xf6   : > { %1038 = vmatmul.mubr.f32.vlgmr.msra.gmra.mrb[16].mxu0 %v983_v52 }
  0xf7   : > { %866 = vst [vmem:[%s1424_s11] sm:$0xff] %v865_v54   ;;  %v986_v55 = vpop.f32.mrb[2].mxu0 }
  0xf8   : > { %v362_v56 = vpop.f32.mrb[3].mxu0 }
  0xf9   : > { %v870_v57 = vpack.c.bf16 %v986_v55, %v362_v56  ;;  %1040 = vmatprep.mubr.f32.mxu0 %v362_v56 }
  0xfa   : > { %1041 = vmatmul.mubr.f32.gmra.mrb[18].mxu0 %v986_v55 }
  0xfb   : > { %902 = vst [vmem:[%s1424_s11 + $0x8] sm:$0xff] %v870_v57   ;;  %v989_v58 = vpop.f32.mrb[4].mxu0 }
  0xfc   : > { %v372_v59 = vpop.f32.mrb[5].mxu0 }
  0xfd   : > { %v875_v60 = vpack.c.bf16 %v989_v58, %v372_v59  ;;  %1043 = vmatprep.mubr.f32.mxu1 %v372_v59 }
  0xfe   : > { %1044 = vmatmul.mubr.f32.vlgmr.msra.gmra.mrb[0].mxu1 %v989_v58 }
  0xff   : > { %903 = vst [vmem:[%s1424_s11 + $0x10] sm:$0xff] %v875_v60   ;;  %v992_v61 = vpop.f32.mrb[6].mxu0 }
 0x100   : > { %v382_v62 = vpop.f32.mrb[7].mxu0 }
 0x101   : > { %v880_v63 = vpack.c.bf16 %v992_v61, %v382_v62  ;;  %1046 = vmatprep.mubr.f32.mxu1 %v382_v62 }
 0x102   : > { %1047 = vmatmul.mubr.f32.gmra.mrb[2].mxu1 %v992_v61 }
 0x103   : > { %904 = vst [vmem:[%s1424_s11 + $0x18] sm:$0xff] %v880_v63   ;;  %v995_v0 = vpop.f32.mrb[8].mxu0 }
 0x104   : > { %v392_v1 = vpop.f32.mrb[9].mxu0 }
 0x105   : > { %v885_v2 = vpack.c.bf16 %v995_v0, %v392_v1  ;;  %1049 = vmatprep.mubr.f32.mxu1 %v392_v1 }
 0x106   : > { %1050 = vmatmul.mubr.f32.gmra.mrb[4].mxu1 %v995_v0 }
 0x107   : > { %905 = vst [vmem:[%s1424_s11 + $0x20] sm:$0xff] %v885_v2   ;;  %v998_v3 = vpop.f32.mrb[10].mxu0 }
 0x108   : > { %v402_v4 = vpop.f32.mrb[11].mxu0 }
 0x109   : > { %v890_v5 = vpack.c.bf16 %v998_v3, %v402_v4  ;;  %1052 = vmatprep.mubr.f32.mxu1 %v402_v4 }
 0x10a   : > { %1053 = vmatmul.mubr.f32.gmra.mrb[6].mxu1 %v998_v3 }
 0x10b   : > { %906 = vst [vmem:[%s1424_s11 + $0x28] sm:$0xff] %v890_v5   ;;  %v1001_v6 = vpop.f32.mrb[12].mxu0 }
 0x10c   : > { %v412_v7 = vpop.f32.mrb[13].mxu0 }
 0x10d   : > { %v895_v8 = vpack.c.bf16 %v1001_v6, %v412_v7  ;;  %1055 = vmatprep.mubr.f32.mxu1 %v412_v7 }
 0x10e   : > { %1056 = vmatmul.mubr.f32.gmra.mrb[8].mxu1 %v1001_v6 }
 0x10f   : > { %907 = vst [vmem:[%s1424_s11 + $0x30] sm:$0xff] %v895_v8   ;;  %v1004_v9 = vpop.f32.mrb[14].mxu0 }
 0x110   : > { %v422_v10 = vpop.f32.mrb[15].mxu0 }
 0x111   : > { %v900_v11 = vpack.c.bf16 %v1004_v9, %v422_v10  ;;  %1058 = vmatprep.mubr.f32.mxu1 %v422_v10 }
 0x112   : > { %1059 = vmatmul.mubr.f32.gmra.mrb[10].mxu1 %v1004_v9 }
 0x113   : > { %908 = vst [vmem:[%s1424_s11 + $0x38] sm:$0xff] %v900_v11  }
 0x114   : > { %1179 = shalt.err (!%p1176_p3)
}
 0x115   : > { %s1180_s30 = scalar_lea.hbm %s1439_s22, 1024  ;;  %s1184_s9 = scalar_lea.hbm %s1528_s3, 3072 }
 0x116   : > { %p1181_p4 = scmp.ne.s32.totalorder %s1439_s22, %s1180_s30  ;;  %p1185_p9 = scmp.lt.u32.totalorder %s1439_s22, %s1528_s3 }
 0x117   : > { %p1186_p10 = scmp.lt.u32.totalorder %s1184_s9, %s1180_s30  ;;  %p1188_p12 = scmp.lt.u32.totalorder %s1180_s30, %s1439_s22 }
 0x118   : > { %p1182_p7 = pnand %p1181_p4, %p1296_p5 }
 0x119   : > { %p1187_p11 = por %p1186_p10, %p1185_p9 }
 0x11a   : > { %p1183_p8 = pneg %p1182_p7 }
 0x11b   : > { %p1189_p13 = por %p1188_p12, %p1187_p11 }
 0x11d   : > { %p1190_p0 = pnand %p1189_p13, %p1183_p8 }
 0x11f   : > { %1193 = shalt.err (!%p1190_p0)
}
 0x120   : > { %s1231_s13 = smov 64   ;;  %s1232_s14 = smov 4   ;;  %vm592_vm1 = vcmask 15360  }
 0x121   : > { %1125 = dma.vmem_to_hbm [thread:$0]  (%p1296_p5), %s1441_s12, 1024, %s1439_s22, %s1445_s23, %s1231_s13, %s1231_s13, %s1232_s14  }
 0x122   : > { %s1474_s19 = scalar_lea.vmem %s1529_s4, %s805_s5 }
 0x1c9   : > { %v1039_v12 = vpop.f32.mrb[16].mxu0 }
 0x1ca   : > { %594 = vst.msk [vmem:[%s1474_s19 + $0x8] sm:$0xff] %vm592_vm1, %v1039_v12  ;;  %v513_v13 = vpop.f32.mrb[17].mxu0 }
 0x1cb   : > { %593 = vst.msk [vmem:[%s1474_s19] sm:$0xff] %vm592_vm1, %v513_v13 }
 0x1cd   : > { %v1042_v14 = vpop.f32.mrb[18].mxu0 }
 0x1ce   : > { %596 = vst.msk [vmem:[%s1474_s19 + $0x18] sm:$0xff] %vm592_vm1, %v1042_v14  ;;  %v523_v15 = vpop.f32.mrb[19].mxu0 }
 0x1cf   : > { %595 = vst.msk [vmem:[%s1474_s19 + $0x10] sm:$0xff] %vm592_vm1, %v523_v15 }
 0x1d1   : > { %v1045_v16 = vpop.f32.mrb[0].mxu1 }
 0x1d2   : > { %598 = vst.msk [vmem:[%s1474_s19 + $0x28] sm:$0xff] %vm592_vm1, %v1045_v16  ;;  %v533_v17 = vpop.f32.mrb[1].mxu1 }
 0x1d3   : > { %597 = vst.msk [vmem:[%s1474_s19 + $0x20] sm:$0xff] %vm592_vm1, %v533_v17 }
 0x1d5   : > { %v1048_v18 = vpop.f32.mrb[2].mxu1 }
 0x1d6   : > { %600 = vst.msk [vmem:[%s1474_s19 + $0x38] sm:$0xff] %vm592_vm1, %v1048_v18  ;;  %v543_v19 = vpop.f32.mrb[3].mxu1 }
 0x1d7   : > { %599 = vst.msk [vmem:[%s1474_s19 + $0x30] sm:$0xff] %vm592_vm1, %v543_v19 }
 0x1d9   : > { %v1051_v20 = vpop.f32.mrb[4].mxu1 }
 0x1da   : > { %602 = vst.msk [vmem:[%s1474_s19 + $0x48] sm:$0xff] %vm592_vm1, %v1051_v20  ;;  %v553_v21 = vpop.f32.mrb[5].mxu1 }
 0x1db   : > { %601 = vst.msk [vmem:[%s1474_s19 + $0x40] sm:$0xff] %vm592_vm1, %v553_v21 }
 0x1dd   : > { %v1054_v22 = vpop.f32.mrb[6].mxu1 }
 0x1de   : > { %604 = vst.msk [vmem:[%s1474_s19 + $0x58] sm:$0xff] %vm592_vm1, %v1054_v22  ;;  %v563_v23 = vpop.f32.mrb[7].mxu1 }
 0x1df   : > { %603 = vst.msk [vmem:[%s1474_s19 + $0x50] sm:$0xff] %vm592_vm1, %v563_v23 }
 0x1e1   : > { %v1057_v24 = vpop.f32.mrb[8].mxu1 }
 0x1e2   : > { %606 = vst.msk [vmem:[%s1474_s19 + $0x68] sm:$0xff] %vm592_vm1, %v1057_v24  ;;  %v573_v25 = vpop.f32.mrb[9].mxu1 }
 0x1e3   : > { %605 = vst.msk [vmem:[%s1474_s19 + $0x60] sm:$0xff] %vm592_vm1, %v573_v25 }
 0x1e5   : > { %v1060_v26 = vpop.f32.mrb[10].mxu1 }
 0x1e6   : > { %608 = vst.msk [vmem:[%s1474_s19 + $0x78] sm:$0xff] %vm592_vm1, %v1060_v26  ;;  %v583_v27 = vpop.f32.mrb[11].mxu1 }
 0x1e7   : > { %607 = vst.msk [vmem:[%s1474_s19 + $0x70] sm:$0xff] %vm592_vm1, %v583_v27 }
 0x1e8 PF: > { %p1131_p5 = scmp.ge.s32.totalorder %s1228_s18, 2  ;;  %s727_s25 = sand.u32 1, %s1216_s15  }
 0x1e9   : > { %s728_s7 = scalar_lea.sflag [#allocation3], %s727_s25 }
 0x1ea   : > { %p1128_p1 = pnand %p1131_p5, %p1300_p6 }
 0x1ec   : > { %1211 = dma.done.wait (!%p1128_p1), %s728_s7, 1024  }
 0x1ed   : > { %1213 = vsyncadd (!%p1128_p1), %s728_s7, 4294966272  ;;  %p15_p2 = scmp.ge.s32.totalorder %s1283_s21, 5   ;;  %s1532_s15 = smov %s1220_s16 }
 0x1ee   : > { %s1533_s16 = smov %s1224_s17  ;;  %s1534_s17 = smov %s1294_s24 }
 0x1ef   : > { %s1535_s18 = smov %s1283_s21  ;;  %17 = sbr.rel (!%p15_p2) target bundleno = 3 (0x3), region = 79 }
 0x1f6   :  { %741 = vsyncpa [#allocation3], 1 }
 0x1f7   :  { %743 = vsyncpa [#allocation3 + $0x1], 1 }

</bundles_post_ra>
